<compile_context>
chip_gen: v5e
topology: v5e:2x2
jax: 0.10.0
libtpu: 0.0.40
codegen_flags: <defaults>
</compile_context>

<pallas_src>
import functools

import jax
import jax.numpy as jnp
from jax.experimental import pallas as pl
from jax.experimental.pallas import tpu as pltpu

EPS = 1e-5
LANE = 128
VMEM_LIMIT_BYTES = 32 * 1024 * 1024


def _rup(x, m):
    return (x + m - 1) // m * m


# --------------------------------------------------------------------------- #
# In-kernel helpers
# --------------------------------------------------------------------------- #
def _conv_taps(src, w_ref, K, L, cd):
    """src: ref/array (tn, L+2P, Cin_p) already zero-padded along L.
    Returns f32 (tn*L, Cout_p) = sum_k src[:, k:k+L, :] @ w[k]."""
    tn = src.shape[0]
    cin = src.shape[-1]
    cout = w_ref.shape[-1]
    acc = jnp.zeros((tn * L, cout), jnp.float32)
    for k in range(K):  # static unroll over taps
        # TODO(synk): the k-offset sublane slice could become a pltpu.roll on the
        # XLU slot; kept as a plain slice for lowering robustness.
        xk = src[:, k:k + L, :].astype(cd).reshape(tn * L, cin)
        acc = acc + jnp.dot(xk, w_ref[k], preferred_element_type=jnp.float32)
    return acc


def _store_stats(st_ref, y):
    """st_ref: (1, 2, C) block; y: (M, C) f32. Writes per-channel sum / sum_sq."""
    cout = y.shape[-1]
    st_ref[:, 0:1, :] = jnp.sum(y, axis=0, keepdims=True).reshape(1, 1, cout)
    st_ref[:, 1:2, :] = jnp.sum(y * y, axis=0, keepdims=True).reshape(1, 1, cout)


# --------------------------------------------------------------------------- #
# Pass A: conv1 (+bias) and shortcut 1x1 conv (+bias); emit partial BN stats.
# --------------------------------------------------------------------------- #
def _pass_a_kernel(x_ref, w1_ref, b1_ref, ws_ref, bs_ref,
                   y1_ref, ys_ref, st1_ref, sts_ref, *, K, P, cd):
    tn, L, cout = y1_ref.shape
    cin = x_ref.shape[-1]

    y1 = _conv_taps(x_ref, w1_ref, K, L, cd) + b1_ref[...]        # (tn*L, Cp) f32

    xs = x_ref[:, P:P + L, :].astype(cd).reshape(tn * L, cin)     # unpadded rows
    ys = jnp.dot(xs, ws_ref[...], preferred_element_type=jnp.float32) + bs_ref[...]

    y1_ref[...] = y1.reshape(tn, L, cout)
    ys_ref[...] = ys.reshape(tn, L, cout)
    _store_stats(st1_ref, y1)
    _store_stats(sts_ref, ys)


# --------------------------------------------------------------------------- #
# Pass B: bn1-affine + relu -> conv2 (+bias); emit partial BN stats for bn2.
# --------------------------------------------------------------------------- #
def _pass_b_kernel(y1_ref, sc1_ref, sh1_ref, w2_ref, b2_ref,
                   y2_ref, st2_ref, h1p_scr, *, K, P, cd):
    tn, L, cout = y1_ref.shape

    y1 = y1_ref[...].reshape(tn * L, cout)
    h1 = jnp.maximum(y1 * sc1_ref[...] + sh1_ref[...], 0.0)       # bn1 + relu

    # Zero only the 2*P halo rows of the padded scratch, then write the interior.
    if P > 0:
        h1p_scr[:, :P, :] = jnp.zeros((tn, P, cout), jnp.float32)
        h1p_scr[:, P + L:, :] = jnp.zeros((tn, P, cout), jnp.float32)
    h1p_scr[:, P:P + L, :] = h1.reshape(tn, L, cout)

    y2 = _conv_taps(h1p_scr, w2_ref, K, L, cd) + b2_ref[...]
    y2_ref[...] = y2.reshape(tn, L, cout)
    _store_stats(st2_ref, y2)


# --------------------------------------------------------------------------- #
# Pass C: bn2-affine + bn_s-affine + residual add + relu.
# --------------------------------------------------------------------------- #
def _pass_c_kernel(y2_ref, ys_ref, sc2_ref, sh2_ref, scs_ref, shs_ref, out_ref):
    tn, L, cout = out_ref.shape
    y2 = y2_ref[...].reshape(tn * L, cout)
    ys = ys_ref[...].reshape(tn * L, cout)
    out = jnp.maximum(y2 * sc2_ref[...] + sh2_ref[...]
                      + ys * scs_ref[...] + shs_ref[...], 0.0)
    out_ref[...] = out.reshape(tn, L, cout)


# --------------------------------------------------------------------------- #
# Glue: fold per-tile (sum, sum_sq) into per-channel BN scale/shift.
# --------------------------------------------------------------------------- #
def _bn_affine(stats, gamma, beta, count):
    s = jnp.sum(stats[:, 0, :], axis=0)
    q = jnp.sum(stats[:, 1, :], axis=0)
    mean = s / count
    var = jnp.maximum(q / count - mean * mean, 0.0)   # biased variance
    scale = gamma.reshape(-1) * jax.lax.rsqrt(var + EPS)
    shift = beta.reshape(-1) - mean * scale
    return scale.reshape(1, -1), shift.reshape(1, -1)


# --------------------------------------------------------------------------- #
# Wrapper
# --------------------------------------------------------------------------- #
def enhanced_residual_block(x, params, *, kernel_size, stride, padding,
                            compute_dtype=jnp.float32):
    """x: (N, C_in, L) float32 (PyTorch NCL). Returns (N, C_out, L) float32."""
    assert stride == 1, "residual shapes only match for stride=1"
    N, Cin, L = x.shape
    K, P = kernel_size, padding
    Cout = params["w1"].shape[0]
    assert params["w1"].shape[-1] == K
    assert L + 2 * P - K + 1 == L, "need 'same' padding so the residual add is valid"

    cd = compute_dtype
    f32 = jnp.float32
    Cin_p, Cout_p = _rup(Cin, LANE), _rup(Cout, LANE)

    # Batch tile (at real sizes pick tn so tn*L >= ~256 rows for full MXU tiles).
    tn = next(t for t in (8, 4, 2, 1) if N % t == 0)
    G = N // tn

    # ---- parameter prep (layout glue, runs in XLA) --------------------------
    def prep_w(w_oik):                       # (Cout, Cin, K) -> (K, Cin_p, Cout_p)
        co, ci, _ = w_oik.shape
        w = jnp.transpose(w_oik, (2, 1, 0)).astype(f32)
        w = jnp.pad(w, ((0, 0), (0, _rup(ci, LANE) - ci), (0, _rup(co, LANE) - co)))
        return w.astype(cd)

    def prep_vec(v, cp):                     # (C,) -> (1, cp) f32
        return jnp.pad(v.astype(f32), (0, cp - v.shape[0])).reshape(1, cp)

    x_nlc = jnp.transpose(x, (0, 2, 1)).astype(f32)
    x_pad = jnp.pad(x_nlc, ((0, 0), (P, P), (0, Cin_p - Cin))).astype(cd)

    w1 = prep_w(params["w1"])
    w2 = prep_w(params["w2"])
    b1 = prep_vec(params["b1"], Cout_p)
    b2 = prep_vec(params["b2"], Cout_p)
    g1, be1 = prep_vec(params["g1"], Cout_p), prep_vec(params["be1"], Cout_p)
    g2, be2 = prep_vec(params["g2"], Cout_p), prep_vec(params["be2"], Cout_p)

    if "ws" in params:                       # projection shortcut (Cin != Cout)
        identity_shortcut = False
        ws = prep_w(params["ws"])[0]                     # (Cin_p, Cout_p)
        bs = prep_vec(params["bs"], Cout_p)
        gs, bes = prep_vec(params["gs"], Cout_p), prep_vec(params["bes"], Cout_p)
    else:                                    # identity shortcut (Cin == Cout)
        identity_shortcut = True
        assert Cin == Cout
        ws = jnp.eye(Cin_p, dtype=cd)
        bs = jnp.zeros((1, Cout_p), f32)

    # ---- BlockSpecs ----------------------------------------------------------
    x_spec = pl.BlockSpec((tn, L + 2 * P, Cin_p), lambda i: (i, 0, 0))
    act_spec = pl.BlockSpec((tn, L, Cout_p), lambda i: (i, 0, 0))
    st_spec = pl.BlockSpec((1, 2, Cout_p), lambda i: (i, 0, 0))

    def full(shape):
        n = len(shape)
        return pl.BlockSpec(shape, lambda i, n=n: (0,) * n)

    cparams = pltpu.CompilerParams(dimension_semantics=("parallel",),
                                   vmem_limit_bytes=VMEM_LIMIT_BYTES)

    cdb = jnp.dtype(cd).itemsize
    MNL = N * L
    cost_a = pl.CostEstimate(
        flops=int(2 * MNL * Cin_p * Cout_p * (K + 1)), transcendentals=0,
        bytes_accessed=int(N * (L + 2 * P) * Cin_p * cdb
                           + (K + 1) * Cin_p * Cout_p * cdb
                           + 2 * MNL * Cout_p * 4))
    cost_b = pl.CostEstimate(
        flops=int(2 * MNL * Cout_p * Cout_p * K + 4 * MNL * Cout_p),
        transcendentals=0,
        bytes_accessed=int(2 * MNL * Cout_p * 4 + K * Cout_p * Cout_p * cdb))
    cost_c = pl.CostEstimate(
        flops=int(6 * MNL * Cout_p), transcendentals=0,
        bytes_accessed=int(3 * MNL * Cout_p * 4))

    # ---- Pass A: conv1 + shortcut conv, partial BN stats ---------------------
    y1, ys, st1, sts = pl.pallas_call(
        functools.partial(_pass_a_kernel, K=K, P=P, cd=cd),
        grid=(G,),
        in_specs=[x_spec, full(w1.shape), full(b1.shape),
                  full(ws.shape), full(bs.shape)],
        out_specs=(act_spec, act_spec, st_spec, st_spec),
        out_shape=(jax.ShapeDtypeStruct((N, L, Cout_p), f32),
                   jax.ShapeDtypeStruct((N, L, Cout_p), f32),
                   jax.ShapeDtypeStruct((G, 2, Cout_p), f32),
                   jax.ShapeDtypeStruct((G, 2, Cout_p), f32)),
        compiler_params=cparams,
        cost_estimate=cost_a,
    )(x_pad, w1, b1, ws, bs)

    count = float(N * L)
    sc1, sh1 = _bn_affine(st1, g1, be1, count)
    if identity_shortcut:
        scs = jnp.ones((1, Cout_p), f32)
        shs = jnp.zeros((1, Cout_p), f32)
    else:
        scs, shs = _bn_affine(sts, gs, bes, count)

    # ---- Pass B: bn1 + relu + conv2, partial BN stats -------------------------
    y2, st2 = pl.pallas_call(
        functools.partial(_pass_b_kernel, K=K, P=P, cd=cd),
        grid=(G,),
        in_specs=[act_spec, full((1, Cout_p)), full((1, Cout_p)),
                  full(w2.shape), full(b2.shape)],
        out_specs=(act_spec, st_spec),
        out_shape=(jax.ShapeDtypeStruct((N, L, Cout_p), f32),
                   jax.ShapeDtypeStruct((G, 2, Cout_p), f32)),
        scratch_shapes=[pltpu.VMEM((tn, L + 2 * P, Cout_p), f32)],
        compiler_params=cparams,
        cost_estimate=cost_b,
    )(y1, sc1, sh1, w2, b2)

    sc2, sh2 = _bn_affine(st2, g2, be2, count)

    # ---- Pass C: bn2 + bn_s + residual add + relu -----------------------------
    out_nlc = pl.pallas_call(
        _pass_c_kernel,
        grid=(G,),
        in_specs=[act_spec, act_spec] + [full((1, Cout_p))] * 4,
        out_specs=act_spec,
        out_shape=jax.ShapeDtypeStruct((N, L, Cout_p), f32),
        compiler_params=cparams,
        cost_estimate=cost_c,
    )(y2, ys, sc2, sh2, scs, shs)

    return jnp.transpose(out_nlc[:, :, :Cout], (0, 2, 1))         # NLC -> NCL


# --------------------------------------------------------------------------- #
# Pure-JAX reference (NCL), matches PyTorch training-mode forward.
# --------------------------------------------------------------------------- #
def _conv1d_ref(x, w, b, pad):
    N, Cin, L = x.shape
    Cout, _, K = w.shape
    xp = jnp.pad(x, ((0, 0), (0, 0), (pad, pad)))
    Lo = L + 2 * pad - K + 1
    out = jnp.zeros((N, Cout, Lo), jnp.float32)
    for k in range(K):
        out = out + jnp.einsum('nil,oi->nol', xp[:, :, k:k + Lo], w[:, :, k])
    return out + b[None, :, None]


def _bn_ref(y, g, beta):
    m = y.mean(axis=(0, 2), keepdims=True)
    v = ((y - m) ** 2).mean(axis=(0, 2), keepdims=True)
    return (y - m) / jnp.sqrt(v + EPS) * g[None, :, None] + beta[None, :, None]


def _ref_forward(x, p, K, P):
    res = _bn_ref(_conv1d_ref(x, p["ws"], p["bs"], 0), p["gs"], p["bes"])
    h = jax.nn.relu(_bn_ref(_conv1d_ref(x, p["w1"], p["b1"], P), p["g1"], p["be1"]))
    h = _bn_ref(_conv1d_ref(h, p["w2"], p["b2"], P), p["g2"], p["be2"])
    return jax.nn.relu(h + res)


if __name__ == "__main__":
    N, Cin, Cout, L = 2, 4, 8, 16
    K, stride, P = 3, 1, 1

    key = jax.random.PRNGKey(0)
    ks = jax.random.split(key, 7)
    params = {
        "w1": 0.2 * jax.random.normal(ks[0], (Cout, Cin, K), jnp.float32),
        "b1": 0.1 * jax.random.normal(ks[1], (Cout,), jnp.float32),
        "g1": jnp.ones((Cout,), jnp.float32),
        "be1": jnp.zeros((Cout,), jnp.float32),
        "w2": 0.2 * jax.random.normal(ks[2], (Cout, Cout, K), jnp.float32),
        "b2": 0.1 * jax.random.normal(ks[3], (Cout,), jnp.float32),
        "g2": jnp.ones((Cout,), jnp.float32),
        "be2": jnp.zeros((Cout,), jnp.float32),
        "ws": 0.2 * jax.random.normal(ks[4], (Cout, Cin, 1), jnp.float32),
        "bs": 0.1 * jax.random.normal(ks[5], (Cout,), jnp.float32),
        "gs": jnp.ones((Cout,), jnp.float32),
        "bes": jnp.zeros((Cout,), jnp.float32),
    }
    x = jax.random.normal(ks[6], (N, Cin, L), jnp.float32)
    ref = _ref_forward(x, params, K, P)

    # f32 MXU operands: tight check against the f32 reference.
    out = enhanced_residual_block(x, params, kernel_size=K, stride=stride,
                                  padding=P, compute_dtype=jnp.float32)
    out = jax.block_until_ready(out)
    assert out.shape == (N, Cout, L), out.shape
    err = float(jnp.abs(out - ref).max())
    assert jnp.allclose(out, ref, atol=2e-4, rtol=2e-4), err

    # bf16 MXU operands (v6e/v7x fast path): loose check, f32 accumulation/BN.
    out_bf16 = enhanced_residual_block(x, params, kernel_size=K, stride=stride,
                                       padding=P, compute_dtype=jnp.bfloat16)
    out_bf16 = jax.block_until_ready(out_bf16)
    err_bf16 = float(jnp.abs(out_bf16 - ref).max())
    assert jnp.allclose(out_bf16, ref, atol=1e-1, rtol=1e-1), err_bf16

    print("KERNEL_OK")
</pallas_src>

<mosaic_0001>
module attributes {stable_mosaic.version = 11 : i64} {
  func.func @_pass_a_kernel(%arg0: i32, %arg1: memref<2x18x128xf32, #tpu.memory_space<vmem>>, %arg2: memref<3x128x128xf32, #tpu.memory_space<vmem>>, %arg3: memref<1x128xf32, #tpu.memory_space<vmem>>, %arg4: memref<128x128xf32, #tpu.memory_space<vmem>>, %arg5: memref<1x128xf32, #tpu.memory_space<vmem>>, %arg6: memref<2x16x128xf32, #tpu.memory_space<vmem>>, %arg7: memref<2x16x128xf32, #tpu.memory_space<vmem>>, %arg8: memref<1x2x128xf32, #tpu.memory_space<vmem>>, %arg9: memref<1x2x128xf32, #tpu.memory_space<vmem>>) attributes {dimension_semantics = [#tpu.dimension_semantics<parallel>], iteration_bounds = array<i64: 1>, scalar_prefetch = 0 : i64, scratch_operands = 0 : i64, tpu.core_type = #tpu.core_type<tc>, window_params = [{transform_indices = @transform_0, window_bounds = array<i64: 2, 18, 128>}, {pipeline_mode = #tpu.pipeline_mode<synchronous>, transform_indices = @transform_1, window_bounds = array<i64: 3, 128, 128>}, {pipeline_mode = #tpu.pipeline_mode<synchronous>, transform_indices = @transform_2, window_bounds = array<i64: 1, 128>}, {pipeline_mode = #tpu.pipeline_mode<synchronous>, transform_indices = @transform_3, window_bounds = array<i64: 128, 128>}, {pipeline_mode = #tpu.pipeline_mode<synchronous>, transform_indices = @transform_4, window_bounds = array<i64: 1, 128>}, {transform_indices = @transform_5, window_bounds = array<i64: 2, 16, 128>}, {transform_indices = @transform_6, window_bounds = array<i64: 2, 16, 128>}, {transform_indices = @transform_7, window_bounds = array<i64: 1, 2, 128>}, {transform_indices = @transform_8, window_bounds = array<i64: 1, 2, 128>}]} {
    %cst = arith.constant 0.000000e+00 : f32
    %0 = vector.broadcast %cst : f32 to vector<32x128xf32>
    %c0 = arith.constant 0 : index
    %c0_0 = arith.constant 0 : index
    %c0_1 = arith.constant 0 : index
    %1 = vector.load %arg1[%c0, %c0_0, %c0_1] : memref<2x18x128xf32, #tpu.memory_space<vmem>>, vector<2x16x128xf32>
    %2 = vector.shape_cast %1 : vector<2x16x128xf32> to vector<32x128xf32>
    %c0_2 = arith.constant 0 : index
    %c0_3 = arith.constant 0 : index
    %c0_4 = arith.constant 0 : index
    %3 = vector.load %arg2[%c0_2, %c0_3, %c0_4] : memref<3x128x128xf32, #tpu.memory_space<vmem>>, vector<1x128x128xf32>
    %4 = vector.shape_cast %3 : vector<1x128x128xf32> to vector<128x128xf32>
    %cst_5 = arith.constant dense<0.000000e+00> : vector<32x128xf32>
    %5 = tpu.matmul %2, %4, %cst_5 {dimension_numbers = #tpu.dot_dimension_numbers<[1], [0], [0], [1], [0, 0, 1, 1], [], []>} : vector<32x128xf32>, vector<128x128xf32>, vector<32x128xf32> -> vector<32x128xf32>
    %6 = arith.addf %0, %5 : vector<32x128xf32>
    %c0_6 = arith.constant 0 : index
    %c1 = arith.constant 1 : index
    %c0_7 = arith.constant 0 : index
    %7 = vector.load %arg1[%c0_6, %c1, %c0_7] : memref<2x18x128xf32, #tpu.memory_space<vmem>>, vector<2x16x128xf32>
    %8 = vector.shape_cast %7 : vector<2x16x128xf32> to vector<32x128xf32>
    %c1_8 = arith.constant 1 : index
    %c0_9 = arith.constant 0 : index
    %c0_10 = arith.constant 0 : index
    %9 = vector.load %arg2[%c1_8, %c0_9, %c0_10] : memref<3x128x128xf32, #tpu.memory_space<vmem>>, vector<1x128x128xf32>
    %10 = vector.shape_cast %9 : vector<1x128x128xf32> to vector<128x128xf32>
    %cst_11 = arith.constant dense<0.000000e+00> : vector<32x128xf32>
    %11 = tpu.matmul %8, %10, %cst_11 {dimension_numbers = #tpu.dot_dimension_numbers<[1], [0], [0], [1], [0, 0, 1, 1], [], []>} : vector<32x128xf32>, vector<128x128xf32>, vector<32x128xf32> -> vector<32x128xf32>
    %12 = arith.addf %6, %11 : vector<32x128xf32>
    %c0_12 = arith.constant 0 : index
    %c2 = arith.constant 2 : index
    %c0_13 = arith.constant 0 : index
    %13 = vector.load %arg1[%c0_12, %c2, %c0_13] : memref<2x18x128xf32, #tpu.memory_space<vmem>>, vector<2x16x128xf32>
    %14 = vector.shape_cast %13 : vector<2x16x128xf32> to vector<32x128xf32>
    %c2_14 = arith.constant 2 : index
    %c0_15 = arith.constant 0 : index
    %c0_16 = arith.constant 0 : index
    %15 = vector.load %arg2[%c2_14, %c0_15, %c0_16] : memref<3x128x128xf32, #tpu.memory_space<vmem>>, vector<1x128x128xf32>
    %16 = vector.shape_cast %15 : vector<1x128x128xf32> to vector<128x128xf32>
    %cst_17 = arith.constant dense<0.000000e+00> : vector<32x128xf32>
    %17 = tpu.matmul %14, %16, %cst_17 {dimension_numbers = #tpu.dot_dimension_numbers<[1], [0], [0], [1], [0, 0, 1, 1], [], []>} : vector<32x128xf32>, vector<128x128xf32>, vector<32x128xf32> -> vector<32x128xf32>
    %18 = arith.addf %12, %17 : vector<32x128xf32>
    %c0_18 = arith.constant 0 : index
    %c0_19 = arith.constant 0 : index
    %19 = vector.load %arg3[%c0_18, %c0_19] : memref<1x128xf32, #tpu.memory_space<vmem>>, vector<1x128xf32>
    %20 = vector.broadcast %19 : vector<1x128xf32> to vector<32x128xf32>
    %21 = arith.addf %18, %20 : vector<32x128xf32>
    %c0_20 = arith.constant 0 : index
    %c1_21 = arith.constant 1 : index
    %c0_22 = arith.constant 0 : index
    %22 = vector.load %arg1[%c0_20, %c1_21, %c0_22] : memref<2x18x128xf32, #tpu.memory_space<vmem>>, vector<2x16x128xf32>
    %23 = vector.shape_cast %22 : vector<2x16x128xf32> to vector<32x128xf32>
    %c0_23 = arith.constant 0 : index
    %c0_24 = arith.constant 0 : index
    %24 = vector.load %arg4[%c0_23, %c0_24] : memref<128x128xf32, #tpu.memory_space<vmem>>, vector<128x128xf32>
    %cst_25 = arith.constant dense<0.000000e+00> : vector<32x128xf32>
    %25 = tpu.matmul %23, %24, %cst_25 {dimension_numbers = #tpu.dot_dimension_numbers<[1], [0], [0], [1], [0, 0, 1, 1], [], []>} : vector<32x128xf32>, vector<128x128xf32>, vector<32x128xf32> -> vector<32x128xf32>
    %c0_26 = arith.constant 0 : index
    %c0_27 = arith.constant 0 : index
    %26 = vector.load %arg5[%c0_26, %c0_27] : memref<1x128xf32, #tpu.memory_space<vmem>>, vector<1x128xf32>
    %27 = vector.broadcast %26 : vector<1x128xf32> to vector<32x128xf32>
    %28 = arith.addf %25, %27 : vector<32x128xf32>
    %29 = vector.shape_cast %21 : vector<32x128xf32> to vector<2x16x128xf32>
    %c0_28 = arith.constant 0 : index
    %c0_29 = arith.constant 0 : index
    %c0_30 = arith.constant 0 : index
    %30 = vector.load %arg6[%c0_28, %c0_29, %c0_30] : memref<2x16x128xf32, #tpu.memory_space<vmem>>, vector<2x16x128xf32>
    tpu.vector_store %arg6[%c0_28, %c0_29, %c0_30], %29 {strides = array<i32>} : memref<2x16x128xf32, #tpu.memory_space<vmem>>, vector<2x16x128xf32>,
    %31 = vector.shape_cast %28 : vector<32x128xf32> to vector<2x16x128xf32>
    %c0_31 = arith.constant 0 : index
    %c0_32 = arith.constant 0 : index
    %c0_33 = arith.constant 0 : index
    %32 = vector.load %arg7[%c0_31, %c0_32, %c0_33] : memref<2x16x128xf32, #tpu.memory_space<vmem>>, vector<2x16x128xf32>
    tpu.vector_store %arg7[%c0_31, %c0_32, %c0_33], %31 {strides = array<i32>} : memref<2x16x128xf32, #tpu.memory_space<vmem>>, vector<2x16x128xf32>,
    %cst_34 = arith.constant dense<0.000000e+00> : vector<128xf32>
    %33 = vector.multi_reduction <add>, %21, %cst_34 [0] : vector<32x128xf32> to vector<128xf32>
    %34 = vector.shape_cast %33 : vector<128xf32> to vector<1x128xf32>
    %35 = vector.shape_cast %34 : vector<1x128xf32> to vector<1x1x128xf32>
    %c0_35 = arith.constant 0 : index
    %c0_36 = arith.constant 0 : index
    %c0_37 = arith.constant 0 : index
    %36 = vector.load %arg8[%c0_35, %c0_36, %c0_37] : memref<1x2x128xf32, #tpu.memory_space<vmem>>, vector<1x1x128xf32>
    tpu.vector_store %arg8[%c0_35, %c0_36, %c0_37], %35 {strides = array<i32>} : memref<1x2x128xf32, #tpu.memory_space<vmem>>, vector<1x1x128xf32>,
    %37 = arith.mulf %21, %21 : vector<32x128xf32>
    %cst_38 = arith.constant dense<0.000000e+00> : vector<128xf32>
    %38 = vector.multi_reduction <add>, %37, %cst_38 [0] : vector<32x128xf32> to vector<128xf32>
    %39 = vector.shape_cast %38 : vector<128xf32> to vector<1x128xf32>
    %40 = vector.shape_cast %39 : vector<1x128xf32> to vector<1x1x128xf32>
    %c0_39 = arith.constant 0 : index
    %c1_40 = arith.constant 1 : index
    %c0_41 = arith.constant 0 : index
    %41 = vector.load %arg8[%c0_39, %c1_40, %c0_41] : memref<1x2x128xf32, #tpu.memory_space<vmem>>, vector<1x1x128xf32>
    tpu.vector_store %arg8[%c0_39, %c1_40, %c0_41], %40 {strides = array<i32>} : memref<1x2x128xf32, #tpu.memory_space<vmem>>, vector<1x1x128xf32>,
    %cst_42 = arith.constant dense<0.000000e+00> : vector<128xf32>
    %42 = vector.multi_reduction <add>, %28, %cst_42 [0] : vector<32x128xf32> to vector<128xf32>
    %43 = vector.shape_cast %42 : vector<128xf32> to vector<1x128xf32>
    %44 = vector.shape_cast %43 : vector<1x128xf32> to vector<1x1x128xf32>
    %c0_43 = arith.constant 0 : index
    %c0_44 = arith.constant 0 : index
    %c0_45 = arith.constant 0 : index
    %45 = vector.load %arg9[%c0_43, %c0_44, %c0_45] : memref<1x2x128xf32, #tpu.memory_space<vmem>>, vector<1x1x128xf32>
    tpu.vector_store %arg9[%c0_43, %c0_44, %c0_45], %44 {strides = array<i32>} : memref<1x2x128xf32, #tpu.memory_space<vmem>>, vector<1x1x128xf32>,
    %46 = arith.mulf %28, %28 : vector<32x128xf32>
    %cst_46 = arith.constant dense<0.000000e+00> : vector<128xf32>
    %47 = vector.multi_reduction <add>, %46, %cst_46 [0] : vector<32x128xf32> to vector<128xf32>
    %48 = vector.shape_cast %47 : vector<128xf32> to vector<1x128xf32>
    %49 = vector.shape_cast %48 : vector<1x128xf32> to vector<1x1x128xf32>
    %c0_47 = arith.constant 0 : index
    %c1_48 = arith.constant 1 : index
    %c0_49 = arith.constant 0 : index
    %50 = vector.load %arg9[%c0_47, %c1_48, %c0_49] : memref<1x2x128xf32, #tpu.memory_space<vmem>>, vector<1x1x128xf32>
    tpu.vector_store %arg9[%c0_47, %c1_48, %c0_49], %49 {strides = array<i32>} : memref<1x2x128xf32, #tpu.memory_space<vmem>>, vector<1x1x128xf32>,
    return
  }
  func.func @transform_0(%arg0: i32) -> (i32, i32, i32) {
    %c0_i32 = arith.constant 0 : i32
    %c0_i32_0 = arith.constant 0 : i32
    %c0_i32_1 = arith.constant 0 : i32
    return %arg0, %c0_i32, %c0_i32_0 : i32, i32, i32
  }
  func.func @transform_1(%arg0: i32) -> (i32, i32, i32) {
    %c0_i32 = arith.constant 0 : i32
    %c0_i32_0 = arith.constant 0 : i32
    %c0_i32_1 = arith.constant 0 : i32
    %c0_i32_2 = arith.constant 0 : i32
    return %c0_i32, %c0_i32_0, %c0_i32_1 : i32, i32, i32
  }
  func.func @transform_2(%arg0: i32) -> (i32, i32) {
    %c0_i32 = arith.constant 0 : i32
    %c0_i32_0 = arith.constant 0 : i32
    %c0_i32_1 = arith.constant 0 : i32
    return %c0_i32, %c0_i32_0 : i32, i32
  }
  func.func @transform_3(%arg0: i32) -> (i32, i32) {
    %c0_i32 = arith.constant 0 : i32
    %c0_i32_0 = arith.constant 0 : i32
    %c0_i32_1 = arith.constant 0 : i32
    return %c0_i32, %c0_i32_0 : i32, i32
  }
  func.func @transform_4(%arg0: i32) -> (i32, i32) {
    %c0_i32 = arith.constant 0 : i32
    %c0_i32_0 = arith.constant 0 : i32
    %c0_i32_1 = arith.constant 0 : i32
    return %c0_i32, %c0_i32_0 : i32, i32
  }
  func.func @transform_5(%arg0: i32) -> (i32, i32, i32) {
    %c0_i32 = arith.constant 0 : i32
    %c0_i32_0 = arith.constant 0 : i32
    %c0_i32_1 = arith.constant 0 : i32
    return %arg0, %c0_i32, %c0_i32_0 : i32, i32, i32
  }
  func.func @transform_6(%arg0: i32) -> (i32, i32, i32) {
    %c0_i32 = arith.constant 0 : i32
    %c0_i32_0 = arith.constant 0 : i32
    %c0_i32_1 = arith.constant 0 : i32
    return %arg0, %c0_i32, %c0_i32_0 : i32, i32, i32
  }
  func.func @transform_7(%arg0: i32) -> (i32, i32, i32) {
    %c0_i32 = arith.constant 0 : i32
    %c0_i32_0 = arith.constant 0 : i32
    %c0_i32_1 = arith.constant 0 : i32
    return %arg0, %c0_i32, %c0_i32_0 : i32, i32, i32
  }
  func.func @transform_8(%arg0: i32) -> (i32, i32, i32) {
    %c0_i32 = arith.constant 0 : i32
    %c0_i32_0 = arith.constant 0 : i32
    %c0_i32_1 = arith.constant 0 : i32
    return %arg0, %c0_i32, %c0_i32_0 : i32, i32, i32
  }
}

</mosaic_0001>

<bundles_post_ra>
// kernel: tpu_custom_call.1
= control target key start
LH: loop header
LB: loop body
LE: loop exit
PB: predicated region body
PF: predicated region fallthrough
CT: control target
= control target key end

     0   :  { %14 = vsyncpa [#allocation3], 0  ;;  %s686_s0 = inlined_call_operand.vmem [shape: f32[2,18,128], index: 0, kind: input, shape index: {}]   ;;  %s687_s1 = inlined_call_operand.hbm [shape: f32[3,128,128], index: 1, kind: input, shape index: {}]   ;;  %s688_s2 = inlined_call_operand.vmem [shape: f32[1,128], index: 2, kind: input, shape index: {}]   ;;  %s689_s3 = inlined_call_operand.hbm [shape: f32[128,128], index: 3, kind: input, shape index: {}]   ;;  %s690_s4 = inlined_call_operand.vmem [shape: f32[1,128], index: 4, kind: input, shape index: {}]   ;;  %s691_s5 = inlined_call_operand.hbm [shape: f32[2,16,128], index: 5, kind: output, shape index: {0}]   ;;  %s692_s6 = inlined_call_operand.hbm [shape: f32[2,16,128], index: 6, kind: output, shape index: {1}]   ;;  %s693_s7 = inlined_call_operand.hbm [shape: f32[1,2,128], index: 7, kind: output, shape index: {2}]   ;;  %s694_s8 = inlined_call_operand.hbm [shape: f32[1,2,128], index: 8, kind: output, shape index: {3}]  }
   0x1   :  { %15 = vsyncpa [#allocation6], 0 }
   0x2   :  { %16 = vsyncpa [#allocation4], 0 }
   0x3   :  { %17 = vsyncpa [#allocation9], 0 }
   0x4   :  { %18 = vsyncpa [#allocation12], 0  ;;  %s25_s29 = sshll.u32 %s687_s1, 4  ;;  %s558_s30 = smov [#allocation2]   ;;  %s26_s29 = int_to_ptr.hbm [resolvable:$true] %s25_s29 }
   0x5   :  { %s27_s9 = sshll.u32 %s558_s30, 4  ;;  %s40_s12 = sshll.u32 %s689_s3, 4  ;;  %s28_s9 = int_to_ptr.vmem [resolvable:$true] %s27_s9  ;;  %s41_s12 = int_to_ptr.hbm [resolvable:$true] %s40_s12 }
   0x6   :  { %s559_s13 = smov 128   ;;  %s560_s14 = smov 8  }
   0x7   :  { %33 = dma.hbm_to_vmem [thread:$0]  %s26_s29, 6144, %s28_s9, [#allocation3], %s559_s13, %s559_s13, %s560_s14  }
   0x8   :  { %s561_s15 = smov [#allocation5]  }
   0x9   :  { %s42_s16 = sshll.u32 %s561_s15, 4  ;;  %s43_s16 = int_to_ptr.vmem [resolvable:$true] %s42_s16 }
   0xa   :  { %48 = dma.hbm_to_vmem [thread:$0]  %s41_s12, 2048, %s43_s16, [#allocation6], %s559_s13, %s559_s13, %s560_s14  }
   0xb   :  { %548 = dma.done.wait [#allocation3], 6144  }
   0xc   :  { %549 = vsyncadd [#allocation3], 4294961152 }
   0xd   :  { %550 = dma.done.wait [#allocation6], 2048  }
   0xe   :  { %551 = vsyncadd [#allocation6], 4294965248  ;;  %v178_v0 = vld [vmem:[#allocation2 + $0x178] sm:$0xff]  ;;  %v177_v2 = vld [vmem:[#allocation2 + $0x170] sm:$0xff]  ;;  %s344_s22 = sshll.u32 %s692_s6, 4  ;;  %s563_s23 = smov [#allocation7]   ;;  %s345_s22 = int_to_ptr.hbm [resolvable:$true] %s344_s22 }
   0xf   :  { %v235_v1 = vld [vmem:[#allocation5 + $0x78] sm:$0xff]  ;;  %179 = vmatpush.msra.mxu2 %v178_v0  ;;  %v234_v3 = vld [vmem:[#allocation5 + $0x70] sm:$0xff]  ;;  %v176_v6 = vld [vmem:[#allocation2 + $0x168] sm:$0xff]  ;;  %s329_s24 = sshll.u32 %s563_s23, 4  ;;  %s331_s27 = sshll.u32 %s691_s5, 4  ;;  %s330_s24 = int_to_ptr.vmem [resolvable:$true] %s329_s24  ;;  %s332_s27 = int_to_ptr.hbm [resolvable:$true] %s331_s27 }
  0x10   :  { %240 = vmatpush.msra.mxu3 %v235_v1  ;;  %v99_v4 = vld [vmem:[#allocation2 + $0xf8] sm:$0xff]  ;;  %v233_v7 = vld [vmem:[#allocation5 + $0x68] sm:$0xff]  ;;  %v98_v8 = vld [vmem:[#allocation2 + $0xf0] sm:$0xff]  ;;  %s564_s5 = smov [#allocation11]   ;;  %s369_s28 = sshll.u32 %s694_s8, 4  ;;  %s370_s28 = int_to_ptr.hbm [resolvable:$true] %s369_s28 }
  0x11   :  { %v78_v5 = vld [vmem:[#allocation2 + $0x78] sm:$0xff]  ;;  %100 = vmatpush.msra.mxu0 %v99_v4  ;;  %180 = vmatpush.msra.mxu2 %v177_v2  ;;  %v77_v9 = vld [vmem:[#allocation2 + $0x70] sm:$0xff]  ;;  %v175_v10 = vld [vmem:[#allocation2 + $0x160] sm:$0xff]  ;;  %s367_s6 = sshll.u32 %s564_s5, 4  ;;  %s565_s29 = smov [#allocation10]   ;;  %s368_s6 = int_to_ptr.vmem [resolvable:$true] %s367_s6 }
  0x12   :  { %129 = vmatpush.msra.mxu1 %v78_v5  ;;  %241 = vmatpush.msra.mxu3 %v234_v3  ;;  %v232_v11 = vld [vmem:[#allocation5 + $0x60] sm:$0xff]  ;;  %v97_v12 = vld [vmem:[#allocation2 + $0xe8] sm:$0xff]  ;;  %v174_v16 = vld [vmem:[#allocation2 + $0x158] sm:$0xff]  ;;  %s356_s30 = sshll.u32 %s565_s29, 4  ;;  %s358_s11 = sshll.u32 %s693_s7, 4  ;;  %s357_s30 = int_to_ptr.vmem [resolvable:$true] %s356_s30  ;;  %s359_s11 = int_to_ptr.hbm [resolvable:$true] %s358_s11 }
  0x13   :  { %101 = vmatpush.msra.mxu0 %v98_v8  ;;  %v76_v13 = vld [vmem:[#allocation2 + $0x68] sm:$0xff]  ;;  %181 = vmatpush.msra.mxu2 %v176_v6  ;;  %v96_v14 = vld [vmem:[#allocation2 + $0xe0] sm:$0xff]  ;;  %v231_v17 = vld [vmem:[#allocation5 + $0x58] sm:$0xff] }
  0x14   :  { %130 = vmatpush.msra.mxu1 %v77_v9  ;;  %242 = vmatpush.msra.mxu3 %v233_v7  ;;  %v75_v15 = vld [vmem:[#allocation2 + $0x60] sm:$0xff]  ;;  %v95_v18 = vld [vmem:[#allocation2 + $0xd8] sm:$0xff]  ;;  %v173_v20 = vld [vmem:[#allocation2 + $0x150] sm:$0xff] }
  0x15   :  { %102 = vmatpush.msra.mxu0 %v97_v12  ;;  %182 = vmatpush.msra.mxu2 %v175_v10  ;;  %v74_v19 = vld [vmem:[#allocation2 + $0x58] sm:$0xff]  ;;  %v230_v21 = vld [vmem:[#allocation5 + $0x50] sm:$0xff]  ;;  %v172_v24 = vld [vmem:[#allocation2 + $0x148] sm:$0xff] }
  0x16   :  { %131 = vmatpush.msra.mxu1 %v76_v13  ;;  %243 = vmatpush.msra.mxu3 %v232_v11  ;;  %v94_v22 = vld [vmem:[#allocation2 + $0xd0] sm:$0xff]  ;;  %v229_v25 = vld [vmem:[#allocation5 + $0x48] sm:$0xff]  ;;  %v171_v28 = vld [vmem:[#allocation2 + $0x140] sm:$0xff] }
  0x17   :  { %103 = vmatpush.msra.mxu0 %v96_v14  ;;  %183 = vmatpush.msra.mxu2 %v174_v16  ;;  %v73_v23 = vld [vmem:[#allocation2 + $0x50] sm:$0xff]  ;;  %v93_v26 = vld [vmem:[#allocation2 + $0xc8] sm:$0xff]  ;;  %v228_v29 = vld [vmem:[#allocation5 + $0x40] sm:$0xff] }
  0x18   :  { %132 = vmatpush.msra.mxu1 %v75_v15  ;;  %244 = vmatpush.msra.mxu3 %v231_v17  ;;  %v72_v27 = vld [vmem:[#allocation2 + $0x48] sm:$0xff]  ;;  %v92_v30 = vld [vmem:[#allocation2 + $0xc0] sm:$0xff]  ;;  %v170_v32 = vld [vmem:[#allocation2 + $0x138] sm:$0xff] }
  0x19   :  { %104 = vmatpush.msra.mxu0 %v95_v18  ;;  %184 = vmatpush.msra.mxu2 %v173_v20  ;;  %v71_v31 = vld [vmem:[#allocation2 + $0x40] sm:$0xff]  ;;  %v227_v33 = vld [vmem:[#allocation5 + $0x38] sm:$0xff]  ;;  %v169_v36 = vld [vmem:[#allocation2 + $0x130] sm:$0xff] }
  0x1a   :  { %133 = vmatpush.msra.mxu1 %v74_v19  ;;  %245 = vmatpush.msra.mxu3 %v230_v21  ;;  %v91_v34 = vld [vmem:[#allocation2 + $0xb8] sm:$0xff]  ;;  %v226_v37 = vld [vmem:[#allocation5 + $0x30] sm:$0xff]  ;;  %v168_v40 = vld [vmem:[#allocation2 + $0x128] sm:$0xff] }
  0x1b   :  { %105 = vmatpush.msra.mxu0 %v94_v22  ;;  %185 = vmatpush.msra.mxu2 %v172_v24  ;;  %v70_v35 = vld [vmem:[#allocation2 + $0x38] sm:$0xff]  ;;  %v90_v38 = vld [vmem:[#allocation2 + $0xb0] sm:$0xff]  ;;  %v225_v41 = vld [vmem:[#allocation5 + $0x28] sm:$0xff] }
  0x1c   :  { %134 = vmatpush.msra.mxu1 %v73_v23  ;;  %246 = vmatpush.msra.mxu3 %v229_v25  ;;  %v69_v39 = vld [vmem:[#allocation2 + $0x30] sm:$0xff]  ;;  %v89_v42 = vld [vmem:[#allocation2 + $0xa8] sm:$0xff]  ;;  %v167_v44 = vld [vmem:[#allocation2 + $0x120] sm:$0xff] }
  0x1d   :  { %106 = vmatpush.msra.mxu0 %v93_v26  ;;  %186 = vmatpush.msra.mxu2 %v171_v28  ;;  %v68_v43 = vld [vmem:[#allocation2 + $0x28] sm:$0xff]  ;;  %v224_v45 = vld [vmem:[#allocation5 + $0x20] sm:$0xff]  ;;  %v166_v48 = vld [vmem:[#allocation2 + $0x118] sm:$0xff] }
  0x1e   :  { %135 = vmatpush.msra.mxu1 %v72_v27  ;;  %247 = vmatpush.msra.mxu3 %v228_v29  ;;  %v88_v46 = vld [vmem:[#allocation2 + $0xa0] sm:$0xff]  ;;  %v223_v49 = vld [vmem:[#allocation5 + $0x18] sm:$0xff]  ;;  %v165_v52 = vld [vmem:[#allocation2 + $0x110] sm:$0xff] }
  0x1f   :  { %107 = vmatpush.msra.mxu0 %v92_v30  ;;  %187 = vmatpush.msra.mxu2 %v170_v32  ;;  %v67_v47 = vld [vmem:[#allocation2 + $0x20] sm:$0xff]  ;;  %v87_v50 = vld [vmem:[#allocation2 + $0x98] sm:$0xff]  ;;  %v222_v53 = vld [vmem:[#allocation5 + $0x10] sm:$0xff] }
  0x20   :  { %136 = vmatpush.msra.mxu1 %v71_v31  ;;  %248 = vmatpush.msra.mxu3 %v227_v33  ;;  %v66_v51 = vld [vmem:[#allocation2 + $0x18] sm:$0xff]  ;;  %v86_v54 = vld [vmem:[#allocation2 + $0x90] sm:$0xff]  ;;  %v164_v56 = vld [vmem:[#allocation2 + $0x108] sm:$0xff] }
  0x21   :  { %108 = vmatpush.msra.mxu0 %v91_v34  ;;  %188 = vmatpush.msra.mxu2 %v169_v36  ;;  %v65_v55 = vld [vmem:[#allocation2 + $0x10] sm:$0xff]  ;;  %v221_v57 = vld [vmem:[#allocation5 + $0x8] sm:$0xff]  ;;  %v163_v60 = vld [vmem:[#allocation2 + $0x100] sm:$0xff] }
  0x22   :  { %137 = vmatpush.msra.mxu1 %v70_v35  ;;  %249 = vmatpush.msra.mxu3 %v226_v37  ;;  %v85_v58 = vld [vmem:[#allocation2 + $0x88] sm:$0xff]  ;;  %v220_v61 = vld [vmem:[#allocation5] sm:$0xff]  ;;  %v61_v8 = vld [vmem:[%s686_s0 + $0x18] sm:$0xff] }
  0x23   :  { %109 = vmatpush.msra.mxu0 %v90_v38  ;;  %189 = vmatpush.msra.mxu2 %v168_v40  ;;  %v64_v59 = vld [vmem:[#allocation2 + $0x8] sm:$0xff]  ;;  %v84_v0 = vld [vmem:[#allocation2 + $0x80] sm:$0xff] }
  0x24   :  { %138 = vmatpush.msra.mxu1 %v69_v39  ;;  %250 = vmatpush.msra.mxu3 %v225_v41  ;;  %v158_v62 = vld [vmem:[%s686_s0 + $0x2] sm:$0xff]  ;;  %v159_v3 = vld [vmem:[%s686_s0 + $0xa] sm:$0xff]  ;;  %v160_v6 = vld [vmem:[%s686_s0 + $0x1a] sm:$0xff] }
  0x25   :  { %110 = vmatpush.msra.mxu0 %v89_v42  ;;  %190 = vmatpush.msra.mxu2 %v167_v44  ;;  %v79_v63 = vld [vmem:[%s686_s0 + $0x1] sm:$0xff]  ;;  %v80_v4 = vld [vmem:[%s686_s0 + $0x9] sm:$0xff]  ;;  %v81_v7 = vld [vmem:[%s686_s0 + $0x19] sm:$0xff] }
  0x26   :  { %139 = vmatpush.msra.mxu1 %v68_v43  ;;  %251 = vmatpush.msra.mxu3 %v224_v45  ;;  %v63_v1 = vld [vmem:[#allocation2] sm:$0xff]  ;;  %v60_v5 = vld [vmem:[%s686_s0 + $0x8] sm:$0xff] }
  0x27   :  { %111 = vmatpush.msra.mxu0 %v88_v46  ;;  %191 = vmatpush.msra.mxu2 %v166_v48  ;;  %v59_v2 = vld [vmem:[%s686_s0] sm:$0xff] }
  0x28   :  { %140 = vmatpush.msra.mxu1 %v67_v47  ;;  %252 = vmatpush.msra.mxu3 %v223_v49  ;;  %v161_v9 = vld [vmem:[%s686_s0 + $0x22] sm:$0xff]  ;;  %v403_v15 = vld [vmem:[%s690_s4] ss:$0 sm:$0xff] }
  0x29   :  { %112 = vmatpush.msra.mxu0 %v87_v50  ;;  %192 = vmatpush.msra.mxu2 %v165_v52  ;;  %v82_v10 = vld [vmem:[%s686_s0 + $0x21] sm:$0xff]  ;;  %v402_v16 = vld [vmem:[%s688_s2] ss:$0 sm:$0xff] }
  0x2a   :  { %141 = vmatpush.msra.mxu1 %v66_v51  ;;  %253 = vmatpush.msra.mxu3 %v222_v53  ;;  %v62_v11 = vld [vmem:[%s686_s0 + $0x20] sm:$0xff]  ;;  %s562_s0 = smov [#allocation8]  }
  0x2b   :  { %113 = vmatpush.msra.mxu0 %v86_v54  ;;  %193 = vmatpush.msra.mxu2 %v164_v56  ;;  %s665_s2 = sshll.u32 %s562_s0, 4  ;;  %s343_s2 = int_to_ptr.vmem [resolvable:$true] %s665_s2 }
  0x2c   :  { %142 = vmatpush.msra.mxu1 %v65_v55  ;;  %254 = vmatpush.msra.mxu3 %v221_v57 }
  0x2d   :  { %114 = vmatpush.msra.mxu0 %v85_v58  ;;  %194 = vmatpush.msra.mxu2 %v163_v60 }
  0x2e   :  { %143 = vmatpush.msra.mxu1 %v64_v59  ;;  %255 = vmatpush.msra.mxu3 %v220_v61 }
  0x2f   :  { %195 = vmatmul.f32.vlgmr.msra.gmra.mxu2 %v158_v62  ;;  %256 = vmatmul.f32.vlgmr.msra.gmra.mxu3 %v79_v63 }
  0x30   :  { %115 = vmatpush.msra.mxu0 %v84_v0  ;;  %144 = vmatpush.msra.mxu1 %v63_v1 }
  0x31   :  { %116 = vmatmul.f32.vlgmr.msra.gmra.mxu0 %v79_v63  ;;  %145 = vmatmul.f32.vlgmr.msra.gmra.mxu1 %v59_v2 }
  0x37   :  { %198 = vmatmul.f32.gmra.mxu2 %v159_v3  ;;  %259 = vmatmul.f32.gmra.mxu3 %v80_v4 }
  0x39   :  { %119 = vmatmul.f32.gmra.mxu0 %v80_v4  ;;  %148 = vmatmul.f32.gmra.mxu1 %v60_v5 }
  0x3f   :  { %201 = vmatmul.f32.gmra.mxu2 %v160_v6  ;;  %262 = vmatmul.f32.gmra.mxu3 %v81_v7 }
  0x41   :  { %122 = vmatmul.f32.gmra.mxu0 %v81_v7  ;;  %151 = vmatmul.f32.gmra.mxu1 %v61_v8 }
  0x47   :  { %204 = vmatmul.f32.gmra.mxu2 %v161_v9  ;;  %265 = vmatmul.f32.gmra.mxu3 %v82_v10 }
  0x49   :  { %125 = vmatmul.f32.gmra.mxu0 %v82_v10  ;;  %154 = vmatmul.f32.gmra.mxu1 %v62_v11 }
  0xae   :  { %v117_v12 = vpop.f32.mrf.mxu0  ;;  %v146_v13 = vpop.f32.mrf.mxu1 }
  0xaf   :  { %v147_v14 = vadd.f32 %v146_v13, %v117_v12 }
  0xb2   :  { %v196_v17 = vpop.f32.mrf.mxu2  ;;  %v257_v18 = vpop.f32.mrf.mxu3 }
  0xb3   :  { %v208_v19 = vadd.f32 %v196_v17, %v147_v14  ;;  %v258_v20 = vadd.f32 %v403_v15, %v257_v18 }
  0xb5   :  { %v216_v21 = vadd.f32 %v402_v16, %v208_v19  ;;  %273 = vst [vmem:[#allocation8] sm:$0xff] %v258_v20  ;;  %v311_v43 = vmul.f32 %v258_v20, %v258_v20 }
  0xb6   :  { %v120_v22 = vpop.f32.mrf.mxu0  ;;  %v149_v23 = vpop.f32.mrf.mxu1 }
  0xb7   :  { %269 = vst [vmem:[#allocation7] sm:$0xff] %v216_v21  ;;  %v150_v24 = vadd.f32 %v149_v23, %v120_v22  ;;  %v287_v46 = vmul.f32 %v216_v21, %v216_v21 }
  0xba   :  { %v199_v25 = vpop.f32.mrf.mxu2  ;;  %v260_v26 = vpop.f32.mrf.mxu3 }
  0xbb   :  { %v209_v27 = vadd.f32 %v199_v25, %v150_v24  ;;  %v261_v28 = vadd.f32 %v403_v15, %v260_v26 }
  0xbd   :  { %v217_v29 = vadd.f32 %v402_v16, %v209_v27  ;;  %274 = vst [vmem:[#allocation8 + $0x8] sm:$0xff] %v261_v28  ;;  %v312_v40 = vmul.f32 %v261_v28, %v261_v28  ;;  %v301_v44 = vadd.f32 %v261_v28, %v258_v20 }
  0xbe   :  { %v123_v30 = vpop.f32.mrf.mxu0  ;;  %v152_v31 = vpop.f32.mrf.mxu1 }
  0xbf   :  { %270 = vst [vmem:[#allocation7 + $0x8] sm:$0xff] %v217_v29  ;;  %v153_v32 = vadd.f32 %v152_v31, %v123_v30  ;;  %v288_v42 = vmul.f32 %v217_v29, %v217_v29  ;;  %v277_v47 = vadd.f32 %v217_v29, %v216_v21  ;;  %v315_v51 = vadd.f32 %v312_v40, %v311_v43 }
  0xc1   :  { %v291_v55 = vadd.f32 %v288_v42, %v287_v46 }
  0xc2   :  { %v202_v33 = vpop.f32.mrf.mxu2  ;;  %v263_v34 = vpop.f32.mrf.mxu3 }
  0xc3   :  { %v210_v35 = vadd.f32 %v202_v33, %v153_v32  ;;  %v264_v36 = vadd.f32 %v403_v15, %v263_v34 }
  0xc5   :  { %v218_v37 = vadd.f32 %v402_v16, %v210_v35  ;;  %275 = vst [vmem:[#allocation8 + $0x10] sm:$0xff] %v264_v36  ;;  %v313_v45 = vmul.f32 %v264_v36, %v264_v36  ;;  %v302_v52 = vadd.f32 %v301_v44, %v264_v36 }
  0xc6   :  { %v126_v38 = vpop.f32.mrf.mxu0  ;;  %v155_v39 = vpop.f32.mrf.mxu1 }
  0xc7   :  { %271 = vst [vmem:[#allocation7 + $0x10] sm:$0xff] %v218_v37  ;;  %v156_v41 = vadd.f32 %v155_v39, %v126_v38  ;;  %v289_v48 = vmul.f32 %v218_v37, %v218_v37  ;;  %v278_v56 = vadd.f32 %v277_v47, %v218_v37  ;;  %v316_v57 = vadd.f32 %v315_v51, %v313_v45 }
  0xc9   :  { %v292_v61 = vadd.f32 %v291_v55, %v289_v48 }
  0xca   :  { %v205_v49 = vpop.f32.mrf.mxu2  ;;  %v266_v50 = vpop.f32.mrf.mxu3 }
  0xcb   :  { %v211_v53 = vadd.f32 %v205_v49, %v156_v41  ;;  %v267_v54 = vadd.f32 %v403_v15, %v266_v50 }
  0xcd   :  { %v219_v58 = vadd.f32 %v402_v16, %v211_v53  ;;  %276 = vst [vmem:[#allocation8 + $0x18] sm:$0xff] %v267_v54  ;;  %v303_v59 = vadd.f32 %v302_v52, %v267_v54  ;;  %v314_v60 = vmul.f32 %v267_v54, %v267_v54 }
  0xce   :  { %350 = dma.vmem_to_hbm [thread:$0]  %s343_s2, 512, %s345_s22, [#allocation9], %s559_s13, %s559_s13, %s560_s14  }
  0xcf   :  { %272 = vst [vmem:[#allocation7 + $0x18] sm:$0xff] %v219_v58  ;;  %v279_v62 = vadd.f32 %v278_v56, %v219_v58  ;;  %v290_v63 = vmul.f32 %v219_v58, %v219_v58  ;;  %v304_v0 = vrot.slane %v303_v59, 4  ;;  %v317_v1 = vadd.f32 %v316_v57, %v314_v60 }
  0xd0   :  { %337 = dma.vmem_to_hbm [thread:$0]  %s330_s24, 512, %s332_s27, [#allocation4], %s559_s13, %s559_s13, %s560_s14  }
  0xd1   :  { %v280_v2 = vrot.slane %v279_v62, 4  ;;  %v293_v3 = vadd.f32 %v292_v61, %v290_v63  ;;  %v305_v4 = vadd.f32 %v304_v0, %v303_v59  ;;  %v318_v5 = vrot.slane %v317_v1, 4 }
  0xd3   :  { %v281_v6 = vadd.f32 %v280_v2, %v279_v62  ;;  %v294_v7 = vrot.slane %v293_v3, 4  ;;  %v306_v8 = vrot.slane %v305_v4, 2  ;;  %v319_v9 = vadd.f32 %v318_v5, %v317_v1 }
  0xd5   :  { %v282_v10 = vrot.slane %v281_v6, 2  ;;  %v295_v11 = vadd.f32 %v294_v7, %v293_v3  ;;  %v307_v12 = vadd.f32 %v306_v8, %v305_v4  ;;  %v320_v13 = vrot.slane %v319_v9, 2 }
  0xd7   :  { %v283_v14 = vadd.f32 %v282_v10, %v281_v6  ;;  %v296_v15 = vrot.slane %v295_v11, 2  ;;  %v308_v16 = vrot.slane %v307_v12, 1  ;;  %v321_v17 = vadd.f32 %v320_v13, %v319_v9 }
  0xd9   :  { %v284_v18 = vrot.slane %v283_v14, 1  ;;  %v297_v19 = vadd.f32 %v296_v15, %v295_v11  ;;  %v309_v20 = vadd.f32 %v308_v16, %v307_v12  ;;  %v322_v21 = vrot.slane %v321_v17, 1 }
  0xdb   :  { %v285_v22 = vadd.f32 %v284_v18, %v283_v14  ;;  %v298_v23 = vrot.slane %v297_v19, 1  ;;  %310 = vst [vmem:[#allocation11] sm:$0x1] %v309_v20  ;;  %v323_v24 = vadd.f32 %v322_v21, %v321_v17 }
  0xdd   :  { %286 = vst [vmem:[#allocation10] sm:$0x1] %v285_v22  ;;  %v299_v25 = vadd.f32 %v298_v23, %v297_v19 }
  0xde   :  { %324 = vst [vmem:[#allocation11 + $0x1] sm:$0x1] %v323_v24 }
  0xdf   :  { %300 = vst [vmem:[#allocation10 + $0x1] sm:$0x1] %v299_v25  ;;  %372 = dma.vmem_to_hbm [thread:$0]  %s368_s6, 32, %s370_s28, [#allocation12]  }
  0xe0   :  { %361 = dma.vmem_to_hbm [thread:$0]  %s357_s30, 32, %s359_s11, [#allocation9]  }
  0xe1   :  { %552 = dma.done.wait [#allocation4], 512  }
  0xe2   :  { %553 = vsyncadd [#allocation4], 4294966784 }
  0xe3   :  { %554 = dma.done.wait [#allocation9], 544  }
  0xe4   :  { %555 = vsyncadd [#allocation9], 4294966752 }
  0xe5   :  { %556 = dma.done.wait [#allocation12], 32  }
  0xe6   :  { %557 = vsyncadd [#allocation12], 4294967264 }
  0xe7   :  { %389 = vsyncpa [#allocation3], 1 }
  0xe8   :  { %390 = vsyncpa [#allocation6], 1 }
  0xe9   :  { %391 = vsyncpa [#allocation4], 1 }
  0xea   :  { %392 = vsyncpa [#allocation9], 1 }
  0xeb   :  { %393 = vsyncpa [#allocation12], 1 }

</bundles_post_ra>
